<compile_context>
chip_gen: v7x
topology: tpu7x:2x2x1
jax: 0.10.0
libtpu: 0.0.40
codegen_flags: <defaults>
</compile_context>

<pallas_src>
import math

import jax
import jax.numpy as jnp
from jax.experimental import pallas as pl
from jax.experimental.pallas import tpu as pltpu

LANE = 128
SUBLANE = 8


def _round_up(v, m):
    return ((v + m - 1) // m) * m


def actor_mlp_kernel(x_ref, w_ref, b_ref, out_ref):
    """x_ref: (bt, in_dim); w_ref: (L, F, F) compute dtype; b_ref: (L, 1, F) f32;
    out_ref: (bt, F) f32."""
    n_layers, F, _ = w_ref.shape          # static
    bt, in_dim = x_ref.shape              # static
    cdt = w_ref.dtype                     # compute dtype = packed weight dtype

    # Zero-pad the raw observation features up to the lane-aligned width F
    # *inside* the kernel (padded weight rows are zero, so this is exact).
    # This replaces the wrapper-side (batch_p, 128) pad -> saves a full HBM
    # round trip and a dispatch on the latency path.
    h = x_ref[...].astype(cdt)
    if in_dim < F:
        h = jnp.concatenate([h, jnp.zeros((bt, F - in_dim), cdt)], axis=1)

    for l in range(n_layers):             # static unroll over layers
        acc = jnp.dot(h, w_ref[l], preferred_element_type=jnp.float32) + b_ref[l]
        if l < n_layers - 1:
            h = jnp.maximum(acc, 0.0).astype(cdt)   # hidden layers: ReLU
        else:
            h = jnp.tanh(acc)                        # output layer: tanh (f32)
    out_ref[...] = h.astype(out_ref.dtype)


def pack_actor_params(params, weight_dtype=jnp.float32):
    """Pack [(W, b), ...] into one padded weight slab and one bias slab.

    W_l: (in_l, out_l), b_l: (1, out_l).  All feature dims are zero-padded to a
    common lane-aligned width F; zero padding is exact (relu(0)=0, tanh(0)=0,
    padded rows/cols contribute nothing).  Weights are pre-cast ONCE here to
    `weight_dtype` (use jnp.bfloat16 for the bf16 MXU path on v6e/v7x; it also
    halves the VMEM-resident weight slab).  Biases stay f32 (f32 accumulation).
    Returns (w_packed (L,F,F) weight_dtype, b_packed (L,1,F) f32).
    """
    dims = [params[0][0].shape[0]] + [w.shape[1] for (w, _) in params]
    F = max(_round_up(d, LANE) for d in dims)
    L = len(params)
    w_packed = jnp.zeros((L, F, F), weight_dtype)
    b_packed = jnp.zeros((L, 1, F), jnp.float32)
    for l, (w, b) in enumerate(params):
        fi, fo = w.shape
        w_packed = w_packed.at[l, :fi, :fo].set(w.astype(weight_dtype))
        b_packed = b_packed.at[l, 0, :fo].set(b.reshape(-1).astype(jnp.float32))
    return w_packed, b_packed


def actor_forward(x, w_packed, b_packed, out_dim, *, batch_tile=1024):
    """x: (batch, in_dim).  Returns (batch, out_dim) f32 actions in (-1, 1).

    batch_tile: rows per grid step.  Default 1024 keeps the per-step pipeline
    overhead (~0.35 us) well amortized while double-buffered in/out activation
    tiles stay ~1-2 MiB (far under every generation's scoped VMEM); raise to
    2048-4096 for very large batches (largest gain on low-bandwidth v5e).
    """
    batch, in_dim = x.shape
    L, F, _ = w_packed.shape
    assert in_dim <= F, "input dim exceeds packed feature width"

    # Batch tiling.  Cap the tile at ~batch/2 so the grid has >= 2 steps and
    # v7x's two TensorCores both get work via dimension_semantics=("parallel",).
    # Tiny batches use a single full-batch block (no padding, 1 dispatch).
    if batch >= 2 * SUBLANE:
        half = _round_up((batch + 1) // 2, SUBLANE)
        bt = min(_round_up(batch_tile, SUBLANE), half)
        batch_p = _round_up(batch, bt)
    else:
        bt = batch
        batch_p = batch

    x_in = x
    if batch_p != batch:
        # Only the narrow (batch_p, in_dim) input gets ragged-row padding; the
        # 128-lane feature padding happens inside the kernel.
        x_in = jnp.zeros((batch_p, in_dim), x.dtype).at[:batch].set(x)

    grid = (batch_p // bt,)
    out_p = pl.pallas_call(
        actor_mlp_kernel,
        out_shape=jax.ShapeDtypeStruct((batch_p, F), jnp.float32),
        grid_spec=pltpu.PrefetchScalarGridSpec(
            num_scalar_prefetch=0,
            grid=grid,
            in_specs=[
                # Activations: one batch tile per grid step, raw feature width.
                pl.BlockSpec((bt, in_dim), lambda i: (i, 0)),
                # Packed weights / biases: constant block index -> stay
                # VMEM-resident, DMA'd once, never re-fetched across the grid.
                # TODO(synk): if hidden dims grow toward 2048, also set
                # pipeline_mode=pl.Buffered(1) here (constant index_map makes
                # double-buffering pure VMEM waste) and keep bf16 weights.
                pl.BlockSpec((L, F, F), lambda i: (0, 0, 0)),
                pl.BlockSpec((L, 1, F), lambda i: (0, 0, 0)),
            ],
            out_specs=pl.BlockSpec((bt, F), lambda i: (i, 0)),
        ),
        compiler_params=pltpu.CompilerParams(
            # Batch tiles are independent -> shard across v7x's 2 TensorCores.
            dimension_semantics=("parallel",)),
    )(x_in, w_packed, b_packed)

    # NOTE: callers that fuse into a following op can consume out_p (the
    # lane-dense padded slab) directly and drop this XLA slice from the
    # latency path; we return the logical shape here to match the module.
    return out_p[:batch, :out_dim]


def init_actor_params(key, input_dim, hidden_layer_dims, output_dim):
    """Matches the PyTorch init: uniform(-l, l) with l = 1/sqrt(out_features)
    (PyTorch weight.size()[0] == out_features), for both weight and bias."""
    dims = [input_dim] + list(hidden_layer_dims) + [output_dim]
    params = []
    for i in range(len(dims) - 1):
        fan_in, fan_out = dims[i], dims[i + 1]
        l = 1.0 / math.sqrt(fan_out)
        key, kw, kb = jax.random.split(key, 3)
        w = jax.random.uniform(kw, (fan_in, fan_out), jnp.float32,
                               minval=-l, maxval=l)
        b = jax.random.uniform(kb, (1, fan_out), jnp.float32,
                               minval=-l, maxval=l)
        params.append((w, b))
    return params


def _reference(x, params):
    h = x
    for (w, b) in params[:-1]:
        h = jax.nn.relu(h @ w + b)
    return jnp.tanh(h @ params[-1][0] + params[-1][1])


if __name__ == "__main__":
    # Shapes implied by the module: input_shape=(4,), hidden=[32, 32],
    # output_shape=(2,), small batch=2.
    batch = 2
    input_dim = 4
    hidden_layer_dims = [32, 32]
    output_dim = 2

    key = jax.random.PRNGKey(0)
    key, kx, kx2 = jax.random.split(key, 3)
    x = jax.random.normal(kx, (batch, input_dim), jnp.float32)
    params = init_actor_params(key, input_dim, hidden_layer_dims, output_dim)

    # Exact f32 path: pack once (2 padded buffers -> 2 DMA descriptors/call).
    w_f32, b_f32 = pack_actor_params(params)

    # Small-batch call (matches original module usage): single grid step,
    # no wrapper-side padding, one pallas dispatch + one slice.
    out = jax.block_until_ready(actor_forward(x, w_f32, b_f32, output_dim))
    ref = _reference(x, params)
    assert out.shape == (batch, output_dim)
    assert jnp.allclose(out, ref, atol=1e-5), "mismatch vs reference (small)"

    # Larger ragged batch exercises the >=2-step batch grid + row padding path.
    big_batch = 300
    x_big = jax.random.normal(kx2, (big_batch, input_dim), jnp.float32)
    out_big = jax.block_until_ready(
        actor_forward(x_big, w_f32, b_f32, output_dim, batch_tile=1024))
    ref_big = _reference(x_big, params)
    assert out_big.shape == (big_batch, output_dim)
    assert jnp.allclose(out_big, ref_big, atol=1e-5), "mismatch vs reference (big)"

    # bf16 MXU path (recommended on v6e/v7x): weights pre-cast once at pack
    # time, f32 accumulation retained; tolerance tied to compute dtype.
    w_bf16, b_bf16 = pack_actor_params(params, weight_dtype=jnp.bfloat16)
    out_bf16 = jax.block_until_ready(
        actor_forward(x_big, w_bf16, b_bf16, output_dim))
    assert out_bf16.shape == (big_batch, output_dim)
    assert jnp.allclose(out_bf16, ref_big, atol=3e-2), "mismatch vs reference (bf16)"

    print("KERNEL_OK")
</pallas_src>

<mosaic_0001>
module attributes {stable_mosaic.version = 11 : i64} {
  func.func @actor_mlp_kernel(%arg0: i32, %arg1: memref<2x4xf32, #tpu.memory_space<vmem>>, %arg2: memref<3x128x128xf32, #tpu.memory_space<vmem>>, %arg3: memref<3x1x128xf32, #tpu.memory_space<vmem>>, %arg4: memref<2x128xf32, #tpu.memory_space<vmem>>) attributes {dimension_semantics = [#tpu.dimension_semantics<parallel>], iteration_bounds = array<i64: 1>, scalar_prefetch = 0 : i64, scratch_operands = 0 : i64, tpu.core_type = #tpu.core_type<tc>, window_params = [{transform_indices = @transform_0, window_bounds = array<i64: 2, 4>}, {pipeline_mode = #tpu.pipeline_mode<synchronous>, transform_indices = @transform_1, window_bounds = array<i64: 3, 128, 128>}, {pipeline_mode = #tpu.pipeline_mode<synchronous>, transform_indices = @transform_2, window_bounds = array<i64: 3, 1, 128>}, {transform_indices = @transform_3, window_bounds = array<i64: 2, 128>}]} {
    %c0 = arith.constant 0 : index
    %c0_0 = arith.constant 0 : index
    %0 = vector.load %arg1[%c0, %c0_0] : memref<2x4xf32, #tpu.memory_space<vmem>>, vector<2x4xf32>
    %cst = arith.constant 0.000000e+00 : f32
    %1 = vector.broadcast %cst : f32 to vector<2x124xf32>
    %2 = tpu.concatenate %0, %1 in 1 : vector<2x4xf32>, vector<2x124xf32> -> vector<2x128xf32>
    %c0_1 = arith.constant 0 : index
    %c0_2 = arith.constant 0 : index
    %c0_3 = arith.constant 0 : index
    %3 = vector.load %arg2[%c0_1, %c0_2, %c0_3] : memref<3x128x128xf32, #tpu.memory_space<vmem>>, vector<1x128x128xf32>
    %4 = vector.shape_cast %3 : vector<1x128x128xf32> to vector<128x128xf32>
    %cst_4 = arith.constant dense<0.000000e+00> : vector<2x128xf32>
    %5 = tpu.matmul %2, %4, %cst_4 {dimension_numbers = #tpu.dot_dimension_numbers<[1], [0], [0], [1], [0, 0, 1, 1], [], []>} : vector<2x128xf32>, vector<128x128xf32>, vector<2x128xf32> -> vector<2x128xf32>
    %c0_5 = arith.constant 0 : index
    %c0_6 = arith.constant 0 : index
    %c0_7 = arith.constant 0 : index
    %6 = vector.load %arg3[%c0_5, %c0_6, %c0_7] : memref<3x1x128xf32, #tpu.memory_space<vmem>>, vector<1x1x128xf32>
    %7 = vector.shape_cast %6 : vector<1x1x128xf32> to vector<1x128xf32>
    %8 = vector.broadcast %7 : vector<1x128xf32> to vector<2x128xf32>
    %9 = arith.addf %5, %8 : vector<2x128xf32>
    %cst_8 = arith.constant 0.000000e+00 : f32
    %10 = vector.broadcast %cst_8 : f32 to vector<2x128xf32>
    %11 = arith.maximumf %9, %10 : vector<2x128xf32>
    %c1 = arith.constant 1 : index
    %c0_9 = arith.constant 0 : index
    %c0_10 = arith.constant 0 : index
    %12 = vector.load %arg2[%c1, %c0_9, %c0_10] : memref<3x128x128xf32, #tpu.memory_space<vmem>>, vector<1x128x128xf32>
    %13 = vector.shape_cast %12 : vector<1x128x128xf32> to vector<128x128xf32>
    %cst_11 = arith.constant dense<0.000000e+00> : vector<2x128xf32>
    %14 = tpu.matmul %11, %13, %cst_11 {dimension_numbers = #tpu.dot_dimension_numbers<[1], [0], [0], [1], [0, 0, 1, 1], [], []>} : vector<2x128xf32>, vector<128x128xf32>, vector<2x128xf32> -> vector<2x128xf32>
    %c1_12 = arith.constant 1 : index
    %c0_13 = arith.constant 0 : index
    %c0_14 = arith.constant 0 : index
    %15 = vector.load %arg3[%c1_12, %c0_13, %c0_14] : memref<3x1x128xf32, #tpu.memory_space<vmem>>, vector<1x1x128xf32>
    %16 = vector.shape_cast %15 : vector<1x1x128xf32> to vector<1x128xf32>
    %17 = vector.broadcast %16 : vector<1x128xf32> to vector<2x128xf32>
    %18 = arith.addf %14, %17 : vector<2x128xf32>
    %cst_15 = arith.constant 0.000000e+00 : f32
    %19 = vector.broadcast %cst_15 : f32 to vector<2x128xf32>
    %20 = arith.maximumf %18, %19 : vector<2x128xf32>
    %c2 = arith.constant 2 : index
    %c0_16 = arith.constant 0 : index
    %c0_17 = arith.constant 0 : index
    %21 = vector.load %arg2[%c2, %c0_16, %c0_17] : memref<3x128x128xf32, #tpu.memory_space<vmem>>, vector<1x128x128xf32>
    %22 = vector.shape_cast %21 : vector<1x128x128xf32> to vector<128x128xf32>
    %cst_18 = arith.constant dense<0.000000e+00> : vector<2x128xf32>
    %23 = tpu.matmul %20, %22, %cst_18 {dimension_numbers = #tpu.dot_dimension_numbers<[1], [0], [0], [1], [0, 0, 1, 1], [], []>} : vector<2x128xf32>, vector<128x128xf32>, vector<2x128xf32> -> vector<2x128xf32>
    %c2_19 = arith.constant 2 : index
    %c0_20 = arith.constant 0 : index
    %c0_21 = arith.constant 0 : index
    %24 = vector.load %arg3[%c2_19, %c0_20, %c0_21] : memref<3x1x128xf32, #tpu.memory_space<vmem>>, vector<1x1x128xf32>
    %25 = vector.shape_cast %24 : vector<1x1x128xf32> to vector<1x128xf32>
    %26 = vector.broadcast %25 : vector<1x128xf32> to vector<2x128xf32>
    %27 = arith.addf %23, %26 : vector<2x128xf32>
    %28 = math.tanh %27 : vector<2x128xf32>
    %c0_22 = arith.constant 0 : index
    %c0_23 = arith.constant 0 : index
    %29 = vector.load %arg4[%c0_22, %c0_23] : memref<2x128xf32, #tpu.memory_space<vmem>>, vector<2x128xf32>
    tpu.vector_store %arg4[%c0_22, %c0_23], %28 {strides = array<i32>} : memref<2x128xf32, #tpu.memory_space<vmem>>, vector<2x128xf32>,
    return
  }
  func.func @transform_0(%arg0: i32) -> (i32, i32) {
    %c0_i32 = arith.constant 0 : i32
    %c0_i32_0 = arith.constant 0 : i32
    return %arg0, %c0_i32 : i32, i32
  }
  func.func @transform_1(%arg0: i32) -> (i32, i32, i32) {
    %c0_i32 = arith.constant 0 : i32
    %c0_i32_0 = arith.constant 0 : i32
    %c0_i32_1 = arith.constant 0 : i32
    %c0_i32_2 = arith.constant 0 : i32
    return %c0_i32, %c0_i32_0, %c0_i32_1 : i32, i32, i32
  }
  func.func @transform_2(%arg0: i32) -> (i32, i32, i32) {
    %c0_i32 = arith.constant 0 : i32
    %c0_i32_0 = arith.constant 0 : i32
    %c0_i32_1 = arith.constant 0 : i32
    %c0_i32_2 = arith.constant 0 : i32
    return %c0_i32, %c0_i32_0, %c0_i32_1 : i32, i32, i32
  }
  func.func @transform_3(%arg0: i32) -> (i32, i32) {
    %c0_i32 = arith.constant 0 : i32
    %c0_i32_0 = arith.constant 0 : i32
    return %arg0, %c0_i32 : i32, i32
  }
}

</mosaic_0001>

<bundles_post_ra>
// kernel: tpu_custom_call.1
= control target key start
LH: loop header
LB: loop body
LE: loop exit
PB: predicated region body
PF: predicated region fallthrough
CT: control target
= control target key end

     0   :  { %8 = vsyncpa [#allocation3], 0  ;;  %s773_s0 = inlined_call_operand.hbm [shape: f32[2,4], index: 0, kind: input, shape index: {}]   ;;  %s774_s1 = inlined_call_operand.hbm [shape: f32[3,128,128], index: 1, kind: input, shape index: {}]   ;;  %s775_s2 = inlined_call_operand.vmem [shape: f32[3,1,128], index: 2, kind: input, shape index: {}]   ;;  %s776_s3 = inlined_call_operand.hbm [shape: f32[2,128], index: 3, kind: output, shape index: {}]  }
   0x1   :  { %9 = vsyncpa [#allocation6], 0 }
   0x2   :  { %10 = vsyncpa [#allocation4], 0  ;;  %s663_s12 = smov [#allocation2]   ;;  %s664_s14 = smov [#allocation5]  }
   0x3   :  { %s17_s13 = sshll.u32 %s663_s12, 4  ;;  %s26_s15 = sshll.u32 %s664_s14, 4  ;;  %s18_s13 = int_to_ptr.vmem [resolvable:$true] %s17_s13  ;;  %s691_s15 = int_to_ptr.vmem [resolvable:$true] %s26_s15 }
   0x4   :  { %s591_s18 = scalar_lea.hbm %s773_s0, 32 }
   0x5   :  { %p592_p0 = scmp.ne.s32.totalorder %s773_s0, %s591_s18  ;;  %p595_p1 = scmp.lt.u32.totalorder %s591_s18, %s773_s0 }
   0x7   :  { %p597_p2 = pnand %p595_p1, %p592_p0 }
   0x9   :  { %600 = shalt.err (!%p597_p2)
}
   0xa   :  { %s601_s23 = scalar_lea.vmem %s18_s13, 32  ;;  %p606_p4 = scmp.lt.s32.totalorder %s18_s13, %s18_s13 }
   0xb   :  { %p602_p3 = scmp.ne.s32.totalorder %s18_s13, %s601_s23  ;;  %p607_p5 = scmp.lt.s32.totalorder %s601_s23, %s601_s23 }
   0xd   :  { %p608_p6 = por %p607_p5, %p606_p4 }
   0xf   :  { %p609_p7 = pnand %p608_p6, %p602_p3 }
  0x11   :  { %612 = shalt.err (!%p609_p7)
}
  0x12   :  { %20 = dma.hbm_to_vmem [thread:$0]  %s773_s0, 32, %s18_s13, [#allocation3]  }
  0x13   :  { %s613_s28 = scalar_lea.hbm %s774_s1, 6144 }
  0x14   :  { %p614_p8 = scmp.ne.s32.totalorder %s774_s1, %s613_s28  ;;  %p617_p9 = scmp.lt.u32.totalorder %s613_s28, %s774_s1 }
  0x16   :  { %p619_p10 = pnand %p617_p9, %p614_p8 }
  0x18   :  { %622 = shalt.err (!%p619_p10)
}
  0x19   :  { %s623_s6 = scalar_lea.vmem %s691_s15, 6144  ;;  %p628_p12 = scmp.lt.s32.totalorder %s691_s15, %s691_s15 }
  0x1a   :  { %p624_p11 = scmp.ne.s32.totalorder %s691_s15, %s623_s6  ;;  %p629_p13 = scmp.lt.s32.totalorder %s623_s6, %s623_s6 }
  0x1c   :  { %p630_p0 = por %p629_p13, %p628_p12 }
  0x1e   :  { %p631_p1 = pnand %p630_p0, %p624_p11 }
  0x20   :  { %634 = shalt.err (!%p631_p1)
}
  0x21   :  { %s665_s0 = smov 128   ;;  %s666_s7 = smov 8  }
  0x22   :  { %32 = dma.hbm_to_vmem [thread:$0]  %s774_s1, 6144, %s691_s15, [#allocation6], %s665_s0, %s665_s0, %s666_s7  }
  0x23   :  { %657 = dma.done.wait [#allocation3], 32  }
  0x24   :  { %658 = vsyncadd [#allocation3], 4294967264 }
  0x25   :  { %659 = dma.done.wait [#allocation6], 6144  }
  0x26   :  { %660 = vsyncadd [#allocation6], 4294961152  ;;  %v667_v0 = vmov 0.0|0.0   ;;  %vm668_vm0 = vmmov 0   ;;  %v669_v1 = vmov 0.0   ;;  %v44_v2 = vld [vmem:[#allocation5] sm:$0xff] }
  0x27   :  { %509 = vmatprep.subr.bf16.mxu0 %v667_v0  ;;  %436 = vmatprep.mubr.msk.f32.mxu0 %vm668_vm0, %v669_v1  ;;  %v45_v3 = vld [vmem:[#allocation5 + $0x8] sm:$0xff]  ;;  %v46_v4 = vld [vmem:[#allocation5 + $0x10] sm:$0xff]  ;;  %v47_v6 = vld [vmem:[#allocation5 + $0x18] sm:$0xff]  ;;  %vm42_vm1 = vcmask 31744   ;;  %s670_s15 = smov [#allocation7]  }
  0x28   :  { %533 = vmatprep.subr.bf16.mxu1 %v667_v0  ;;  %471 = vmatprep.mubr.msk.f32.mxu1 %vm668_vm0, %v669_v1  ;;  %v510_v5 = vpack.c.bf16 %v45_v3, %v44_v2  ;;  %v513_v7 = vpack.c.bf16 %v47_v6, %v46_v4  ;;  %v48_v8 = vld [vmem:[#allocation5 + $0x20] sm:$0xff]  ;;  %v49_v9 = vld [vmem:[#allocation5 + $0x28] sm:$0xff]  ;;  %v141_v12 = vld [vmem:[#allocation5 + $0x90] sm:$0xff]  ;;  %s337_s16 = sshll.u32 %s670_s15, 4  ;;  %s338_s16 = int_to_ptr.vmem [resolvable:$true] %s337_s16 }
  0x29   :  { %v139_v10 = vld [vmem:[#allocation5 + $0x80] sm:$0xff]  ;;  %v140_v11 = vld [vmem:[#allocation5 + $0x88] sm:$0xff]  ;;  %v142_v13 = vld [vmem:[#allocation5 + $0x98] sm:$0xff]  ;;  %v516_v14 = vpack.c.bf16 %v49_v9, %v48_v8  ;;  %s635_s17 = scalar_lea.vmem %s338_s16, 32  ;;  %p640_p3 = scmp.lt.s32.totalorder %s338_s16, %s338_s16 }
  0x2a   :  { %511 = vmatpush3.bf16.msra.mxu0 %v510_v5  ;;  %v534_v15 = vpack.c.bf16 %v140_v11, %v139_v10  ;;  %v50_v16 = vld [vmem:[#allocation5 + $0x30] sm:$0xff]  ;;  %v51_v17 = vld [vmem:[#allocation5 + $0x38] sm:$0xff]  ;;  %v537_v18 = vpack.c.bf16 %v142_v13, %v141_v12  ;;  %v143_v19 = vld [vmem:[#allocation5 + $0xa0] sm:$0xff]  ;;  %p636_p2 = scmp.ne.s32.totalorder %s338_s16, %s635_s17  ;;  %p641_p4 = scmp.lt.s32.totalorder %s635_s17, %s635_s17 }
  0x2b   :  { %512 = vmatprep.subr.bf16.mxu0 %v667_v0  ;;  %v144_v20 = vld [vmem:[#allocation5 + $0xa8] sm:$0xff]  ;;  %v519_v21 = vpack.c.bf16 %v51_v17, %v50_v16  ;;  %v52_v22 = vld [vmem:[#allocation5 + $0x40] sm:$0xff]  ;;  %v145_v25 = vld [vmem:[#allocation5 + $0xb0] sm:$0xff] }
  0x2c   :  { %535 = vmatpush3.bf16.msra.mxu1 %v534_v15  ;;  %v53_v23 = vld [vmem:[#allocation5 + $0x48] sm:$0xff]  ;;  %v540_v24 = vpack.c.bf16 %v144_v20, %v143_v19  ;;  %v146_v26 = vld [vmem:[#allocation5 + $0xb8] sm:$0xff]  ;;  %v54_v28 = vld [vmem:[#allocation5 + $0x50] sm:$0xff]  ;;  %p642_p5 = por %p641_p4, %p640_p3 }
  0x2d   :  { %536 = vmatprep.subr.bf16.mxu1 %v667_v0  ;;  %v522_v27 = vpack.c.bf16 %v53_v23, %v52_v22  ;;  %v55_v29 = vld [vmem:[#allocation5 + $0x58] sm:$0xff]  ;;  %v543_v30 = vpack.c.bf16 %v146_v26, %v145_v25  ;;  %v147_v31 = vld [vmem:[#allocation5 + $0xc0] sm:$0xff]  ;;  %v148_v32 = vld [vmem:[#allocation5 + $0xc8] sm:$0xff] }
  0x2e   :  { %514 = vmatpush3.bf16.msra.mxu0 %v513_v7  ;;  %v525_v33 = vpack.c.bf16 %v55_v29, %v54_v28  ;;  %v56_v34 = vld [vmem:[#allocation5 + $0x60] sm:$0xff]  ;;  %v57_v35 = vld [vmem:[#allocation5 + $0x68] sm:$0xff]  ;;  %v546_v36 = vpack.c.bf16 %v148_v32, %v147_v31  ;;  %v149_v37 = vld [vmem:[#allocation5 + $0xd0] sm:$0xff]  ;;  %p643_p6 = pnand %p642_p5, %p636_p2 }
  0x2f   :  { %515 = vmatprep.subr.bf16.mxu0 %v667_v0  ;;  %v150_v38 = vld [vmem:[#allocation5 + $0xd8] sm:$0xff]  ;;  %v528_v39 = vpack.c.bf16 %v57_v35, %v56_v34  ;;  %v58_v40 = vld [vmem:[#allocation5 + $0x70] sm:$0xff]  ;;  %v151_v43 = vld [vmem:[#allocation5 + $0xe0] sm:$0xff] }
  0x30   :  { %538 = vmatpush3.bf16.msra.mxu1 %v537_v18  ;;  %v59_v41 = vld [vmem:[#allocation5 + $0x78] sm:$0xff]  ;;  %v549_v42 = vpack.c.bf16 %v150_v38, %v149_v37  ;;  %v152_v44 = vld [vmem:[#allocation5 + $0xe8] sm:$0xff]  ;;  %v153_v48 = vld [vmem:[#allocation5 + $0xf0] sm:$0xff] }
  0x31   :  { %539 = vmatprep.subr.bf16.mxu1 %v667_v0  ;;  %v531_v45 = vpack.c.bf16 %v59_v41, %v58_v40  ;;  %v552_v46 = vpack.c.bf16 %v152_v44, %v151_v43  ;;  %v41_v47 = vld [vmem:[#allocation2] sm:$0x3]  ;;  %v235_v51 = vld [vmem:[#allocation5 + $0x100] sm:$0xff]  ;;  %v236_v52 = vld [vmem:[#allocation5 + $0x108] sm:$0xff] }
  0x32   :  { %517 = vmatpush3.bf16.msra.mxu0 %v516_v14  ;;  %v154_v49 = vld [vmem:[#allocation5 + $0xf8] sm:$0xff]  ;;  %v237_v53 = vld [vmem:[#allocation5 + $0x110] sm:$0xff]  ;;  %v558_v54 = vpack.c.bf16 %v236_v52, %v235_v51  ;;  %v239_v57 = vld [vmem:[#allocation5 + $0x120] sm:$0xff] }
  0x33   :  { %518 = vmatprep.subr.bf16.mxu0 %v667_v0  ;;  %v555_v50 = vpack.c.bf16 %v154_v49, %v153_v48  ;;  %v238_v55 = vld [vmem:[#allocation5 + $0x118] sm:$0xff]  ;;  %v240_v58 = vld [vmem:[#allocation5 + $0x128] sm:$0xff]  ;;  %v241_v60 = vld [vmem:[#allocation5 + $0x130] sm:$0xff] }
  0x34   :  { %541 = vmatpush3.bf16.msra.mxu1 %v540_v24  ;;  %v561_v56 = vpack.c.bf16 %v238_v55, %v237_v53  ;;  %v564_v59 = vpack.c.bf16 %v240_v58, %v239_v57  ;;  %v242_v61 = vld [vmem:[#allocation5 + $0x138] sm:$0xff]  ;;  %v243_v63 = vld [vmem:[#allocation5 + $0x140] sm:$0xff]  ;;  %v245_v3 = vld [vmem:[#allocation5 + $0x150] sm:$0xff] }
  0x35   :  { %542 = vmatprep.subr.bf16.mxu1 %v667_v0  ;;  %v567_v62 = vpack.c.bf16 %v242_v61, %v241_v60  ;;  %v246_v4 = vld [vmem:[#allocation5 + $0x158] sm:$0xff]  ;;  %v247_v6 = vld [vmem:[#allocation5 + $0x160] sm:$0xff]  ;;  %v248_v7 = vld [vmem:[#allocation5 + $0x168] sm:$0xff] }
  0x36   :  { %520 = vmatpush3.bf16.msra.mxu0 %v519_v21  ;;  %v573_v5 = vpack.c.bf16 %v246_v4, %v245_v3  ;;  %v576_v8 = vpack.c.bf16 %v248_v7, %v247_v6  ;;  %v347_v9 = vld [vmem:[%s775_s2] ss:$0 sm:$0xff]  ;;  %v250_v15 = vld [vmem:[#allocation5 + $0x178] sm:$0xff]  ;;  %v350_v17 = vld [vmem:[%s775_s2 + $0x1] ss:$0 sm:$0xff] }
  0x37   :  { %521 = vmatprep.subr.bf16.mxu0 %v667_v0  ;;  %v249_v14 = vld [vmem:[#allocation5 + $0x170] sm:$0xff]  ;;  %v352_v21 = vld [vmem:[%s775_s2 + $0x2] ss:$0 sm:$0xff] }
  0x38   :  { %544 = vmatpush3.bf16.msra.mxu1 %v543_v30  ;;  %v579_v16 = vpack.c.bf16 %v250_v15, %v249_v14 }
  0x39   :  { %545 = vmatprep.subr.bf16.mxu1 %v667_v0 }
  0x3a   :  { %523 = vmatpush3.bf16.msra.mxu0 %v522_v27 }
  0x3b   :  { %524 = vmatprep.subr.bf16.mxu0 %v667_v0 }
  0x3c   :  { %547 = vmatpush3.bf16.msra.mxu1 %v546_v36 }
  0x3d   :  { %548 = vmatprep.subr.bf16.mxu1 %v667_v0 }
  0x3e   :  { %526 = vmatpush3.bf16.msra.mxu0 %v525_v33 }
  0x3f   :  { %527 = vmatprep.subr.bf16.mxu0 %v667_v0 }
  0x40   :  { %550 = vmatpush3.bf16.msra.mxu1 %v549_v42 }
  0x41   :  { %551 = vmatprep.subr.bf16.mxu1 %v667_v0 }
  0x42   :  { %529 = vmatpush3.bf16.msra.mxu0 %v528_v39 }
  0x43   :  { %530 = vmatprep.subr.bf16.mxu0 %v667_v0 }
  0x44   :  { %553 = vmatpush3.bf16.msra.mxu1 %v552_v46 }
  0x45   :  { %554 = vmatprep.subr.bf16.mxu1 %v667_v0 }
  0x46   :  { %532 = vmatpush3.bf16.msra.mxu0 %v531_v45 }
  0x47   :  { %557 = vmatprep.subr.bf16.mxu0 %v667_v0 }
  0x48   :  { %556 = vmatpush3.bf16.msra.mxu1 %v555_v50 }
  0x49   :  { %437 = vmatmul.mubr.msk.f32.vlgmr.msra.gmra.mrb[0].mxu0 %vm42_vm1, %v41_v47 }
  0x4a   :  { %506 = vmatprep.mubr.msk.f32.mxu0 %vm668_vm0, %v669_v1  ;;  %559 = vmatpush3.bf16.msra.mxu0 %v558_v54  ;;  %v244_v1 = vld [vmem:[#allocation5 + $0x148] sm:$0xff] }
  0x4b   :  { %560 = vmatprep.subr.bf16.mxu0 %v667_v0  ;;  %v570_v2 = vpack.c.bf16 %v244_v1, %v243_v63 }
  0x4e   :  { %562 = vmatpush3.bf16.msra.mxu0 %v561_v56 }
  0x4f   :  { %563 = vmatprep.subr.bf16.mxu0 %v667_v0 }
  0x52   :  { %565 = vmatpush3.bf16.msra.mxu0 %v564_v59 }
  0x53   :  { %566 = vmatprep.subr.bf16.mxu0 %v667_v0 }
  0x56   :  { %568 = vmatpush3.bf16.msra.mxu0 %v567_v62 }
  0x57   :  { %569 = vmatprep.subr.bf16.mxu0 %v667_v0 }
  0x5a   :  { %571 = vmatpush3.bf16.msra.mxu0 %v570_v2 }
  0x5b   :  { %572 = vmatprep.subr.bf16.mxu0 %v667_v0 }
  0x5e   :  { %574 = vmatpush3.bf16.msra.mxu0 %v573_v5 }
  0x5f   :  { %575 = vmatprep.subr.bf16.mxu0 %v667_v0 }
  0x62   :  { %577 = vmatpush3.bf16.msra.mxu0 %v576_v8 }
  0x63   :  { %578 = vmatprep.subr.bf16.mxu0 %v667_v0 }
  0x66   :  { %580 = vmatpush3.bf16.msra.mxu0 %v579_v16 }
 0x11c   :  { %v133_v10 = vpop.f32.mrb[0].mxu0 }
 0x11d   :  { %v134_v11 = vadd.f32 %v347_v9, %v133_v10  ;;  %v438_v12 = vpop.f32.mrb[1].mxu0 }
 0x11f   :  { %v137_v13 = vmax.f32 %v134_v11, 0.0 }
 0x121   :  { %472 = vmatmul.mubr.f32.vlgmr.msra.gmra.mrb[0].mxu1 %v137_v13 }
 0x1f4   :  { %v229_v18 = vpop.f32.mrb[0].mxu1 }
 0x1f5   :  { %v230_v19 = vadd.f32 %v350_v17, %v229_v18  ;;  %v473_v0 = vpop.f32.mrb[1].mxu1 }
 0x1f7   :  { %v233_v20 = vmax.f32 %v230_v19, 0.0 }
 0x1f9   :  { %507 = vmatmul.mubr.f32.vlgmr.msra.gmra.mrb[2].mxu0 %v233_v20 }
 0x2cc   :  { %v325_v22 = vpop.f32.mrb[2].mxu0 }
 0x2cd   :  { %v326_v23 = vadd.f32 %v352_v21, %v325_v22  ;;  %v508_v24 = vpop.f32.mrb[3].mxu0 }
 0x2cf   :  { %589 = vtanh.f32 %v326_v23 }
 0x2d9   :  { %v590_v25 = vpop.eup %589 }
 0x2da   :  { %330 = vst [vmem:[#allocation7] sm:$0x3] %v590_v25 }
 0x2db   :  { %646 = shalt.err (!%p643_p6)
}
 0x2dc   :  { %s647_s2 = scalar_lea.hbm %s776_s3, 32 }
 0x2dd   :  { %p648_p7 = scmp.ne.s32.totalorder %s776_s3, %s647_s2  ;;  %p651_p8 = scmp.lt.u32.totalorder %s647_s2, %s776_s3 }
 0x2df   :  { %p653_p9 = pnand %p651_p8, %p648_p7 }
 0x2e1   :  { %656 = shalt.err (!%p653_p9)
}
 0x2e2   :  { %340 = dma.vmem_to_hbm [thread:$0]  %s338_s16, 32, %s776_s3, [#allocation4]  }
 0x2e3   :  { %661 = dma.done.wait [#allocation4], 32  }
 0x2e4   :  { %662 = vsyncadd [#allocation4], 4294967264 }
 0x2e5   :  { %344 = vsyncpa [#allocation3], 1 }
 0x2e6   :  { %345 = vsyncpa [#allocation6], 1 }
 0x2e7   :  { %346 = vsyncpa [#allocation4], 1 }

</bundles_post_ra>
